<compile_context>
chip_gen: v5e
topology: v5e:2x2
jax: 0.10.0
libtpu: 0.0.40
codegen_flags: <defaults>
</compile_context>

<pallas_src>
import jax
import jax.numpy as jnp
from jax.experimental import pallas as pl
from jax.experimental.pallas import tpu as pltpu


def _fused_flatten_copy_kernel(c_in, e_in, c_out, e_out, sems):
    """Two direct HBM->HBM DMA copies (center, error), overlapped."""
    c_cp = pltpu.make_async_copy(c_in, c_out, sems.at[0])
    e_cp = pltpu.make_async_copy(e_in, e_out, sems.at[1])
    c_cp.start()
    e_cp.start()
    c_cp.wait()
    e_cp.wait()


def flatten_transform_pallas(center, error, *, materialize=True):
    """Mirror of checker.approximation.deepzono.flatten_transform.

    materialize=False (or empty inputs): metadata-only reshape, zero HBM
    traffic, no kernel launch -- the fastest path on every TPU generation.
    materialize=True: produce fresh buffers via one fused HBM->HBM DMA kernel.
    """
    E = error.shape[0]

    if (not materialize) or center.size == 0 or error.size == 0:
        return center.reshape(-1), error.reshape(E, -1)

    c_new, e_new = pl.pallas_call(
        _fused_flatten_copy_kernel,
        out_shape=(
            jax.ShapeDtypeStruct(center.shape, center.dtype),
            jax.ShapeDtypeStruct(error.shape, error.dtype),
        ),
        in_specs=[
            pl.BlockSpec(memory_space=pl.ANY),   # center stays in HBM
            pl.BlockSpec(memory_space=pl.ANY),   # error stays in HBM
        ],
        out_specs=(
            pl.BlockSpec(memory_space=pl.ANY),
            pl.BlockSpec(memory_space=pl.ANY),
        ),
        scratch_shapes=[pltpu.SemaphoreType.DMA((2,))],
    )(center, error)

    # Reshapes below are metadata-only on the contiguous kernel outputs.
    return c_new.reshape(-1), e_new.reshape(E, -1)


class FlattenTransformerPallas:
    """Mirror of FlattenTransformer.forward."""

    def __init__(self, materialize=True):
        self.materialize = materialize

    def __call__(self, center, error):
        return flatten_transform_pallas(center, error,
                                        materialize=self.materialize)


if __name__ == "__main__":
    key = jax.random.PRNGKey(0)
    k1, k2 = jax.random.split(key)

    # center: NCHW image batch; error: zonotope error terms (leading dim = #terms)
    center = jax.random.normal(k1, (2, 4, 16, 16), jnp.float32)
    error = jax.random.normal(k2, (6, 4, 16, 16), jnp.float32)

    mod = FlattenTransformerPallas(materialize=True)   # exercise the Pallas path
    c_out, e_out = mod(center, error)
    jax.block_until_ready((c_out, e_out))

    # Reference: exact PyTorch semantics (flatten / view are pure reshapes).
    c_ref = center.reshape(-1)
    e_ref = error.reshape(error.shape[0], -1)
    assert c_out.shape == c_ref.shape and e_out.shape == e_ref.shape
    assert bool(jnp.array_equal(c_out, c_ref))
    assert bool(jnp.array_equal(e_out, e_ref))

    # Also sanity-check the zero-cost fast path.
    c_fast, e_fast = flatten_transform_pallas(center, error, materialize=False)
    assert bool(jnp.array_equal(c_fast, c_ref))
    assert bool(jnp.array_equal(e_fast, e_ref))

    print("KERNEL_OK")
</pallas_src>

<mosaic_0001>
module attributes {stable_mosaic.version = 11 : i64} {
  func.func @_fused_flatten_copy_kernel(%arg0: memref<2x4x16x16xf32, #tpu.memory_space<any>>, %arg1: memref<6x4x16x16xf32, #tpu.memory_space<any>>, %arg2: memref<2x4x16x16xf32, #tpu.memory_space<any>>, %arg3: memref<6x4x16x16xf32, #tpu.memory_space<any>>, %arg4: memref<2x!tpu.dma_semaphore, #tpu.memory_space<semaphore_mem>>) attributes {dimension_semantics = [], scalar_prefetch = 0 : i64, scratch_operands = 1 : i64, tpu.core_type = #tpu.core_type<tc>} {
    %c0_i32 = arith.constant 0 : i32
    %0 = tpu.memref_slice %arg4[%c0_i32] : memref<2x!tpu.dma_semaphore, #tpu.memory_space<semaphore_mem>> -> memref<1x!tpu.dma_semaphore, #tpu.memory_space<semaphore_mem>>
    %1 = tpu.memref_squeeze %0 : memref<1x!tpu.dma_semaphore, #tpu.memory_space<semaphore_mem>> -> memref<!tpu.dma_semaphore, #tpu.memory_space<semaphore_mem>>
    tpu.enqueue_dma source(%arg0 : memref<2x4x16x16xf32, #tpu.memory_space<any>>) target(%arg2 : memref<2x4x16x16xf32, #tpu.memory_space<any>>) target_semaphore(%1 : memref<!tpu.dma_semaphore, #tpu.memory_space<semaphore_mem>>)
    %c1_i32 = arith.constant 1 : i32
    %2 = tpu.memref_slice %arg4[%c1_i32] : memref<2x!tpu.dma_semaphore, #tpu.memory_space<semaphore_mem>> -> memref<1x!tpu.dma_semaphore, #tpu.memory_space<semaphore_mem>>
    %3 = tpu.memref_squeeze %2 : memref<1x!tpu.dma_semaphore, #tpu.memory_space<semaphore_mem>> -> memref<!tpu.dma_semaphore, #tpu.memory_space<semaphore_mem>>
    tpu.enqueue_dma source(%arg1 : memref<6x4x16x16xf32, #tpu.memory_space<any>>) target(%arg3 : memref<6x4x16x16xf32, #tpu.memory_space<any>>) target_semaphore(%3 : memref<!tpu.dma_semaphore, #tpu.memory_space<semaphore_mem>>)
    %c0_i32_0 = arith.constant 0 : i32
    %4 = tpu.memref_slice %arg4[%c0_i32_0] : memref<2x!tpu.dma_semaphore, #tpu.memory_space<semaphore_mem>> -> memref<1x!tpu.dma_semaphore, #tpu.memory_space<semaphore_mem>>
    %5 = tpu.memref_squeeze %4 : memref<1x!tpu.dma_semaphore, #tpu.memory_space<semaphore_mem>> -> memref<!tpu.dma_semaphore, #tpu.memory_space<semaphore_mem>>
    tpu.wait_dma2 semaphore(%5 : memref<!tpu.dma_semaphore, #tpu.memory_space<semaphore_mem>>) src(%arg0 : memref<2x4x16x16xf32, #tpu.memory_space<any>>) dst(%arg2 : memref<2x4x16x16xf32, #tpu.memory_space<any>>)
    %c1_i32_1 = arith.constant 1 : i32
    %6 = tpu.memref_slice %arg4[%c1_i32_1] : memref<2x!tpu.dma_semaphore, #tpu.memory_space<semaphore_mem>> -> memref<1x!tpu.dma_semaphore, #tpu.memory_space<semaphore_mem>>
    %7 = tpu.memref_squeeze %6 : memref<1x!tpu.dma_semaphore, #tpu.memory_space<semaphore_mem>> -> memref<!tpu.dma_semaphore, #tpu.memory_space<semaphore_mem>>
    tpu.wait_dma2 semaphore(%7 : memref<!tpu.dma_semaphore, #tpu.memory_space<semaphore_mem>>) src(%arg1 : memref<6x4x16x16xf32, #tpu.memory_space<any>>) dst(%arg3 : memref<6x4x16x16xf32, #tpu.memory_space<any>>)
    return
  }
}

</mosaic_0001>

<bundles_post_ra>
// kernel: tpu_custom_call.1
= control target key start
LH: loop header
LB: loop body
LE: loop exit
PB: predicated region body
PF: predicated region fallthrough
CT: control target
= control target key end

     0   :  { %s66_s21 = smov [#allocation2]   ;;  %s67_s22 = smov [#allocation3]   ;;  %s103_s0 = inlined_call_operand.hbm [shape: f32[2,4,16,16], index: 0, kind: input, shape index: {}]   ;;  %s104_s2 = inlined_call_operand.hbm [shape: f32[2,4,16,16], index: 2, kind: output, shape index: {0}]   ;;  %s105_s1 = inlined_call_operand.hbm [shape: f32[6,4,16,16], index: 1, kind: input, shape index: {}]   ;;  %s106_s3 = inlined_call_operand.hbm [shape: f32[6,4,16,16], index: 3, kind: output, shape index: {1}]  }
   0x1   :  { %s13_s14 = sshll.u32 %s103_s0, 4  ;;  %s15_s17 = sshll.u32 %s104_s2, 4  ;;  %s14_s14 = int_to_ptr.hbm [resolvable:$true] %s13_s14  ;;  %s16_s17 = int_to_ptr.hbm [resolvable:$true] %s15_s17 }
   0x2   :  { %s25_s20 = sshll.u32 %s105_s1, 4  ;;  %s68_s23 = smov 0   ;;  %s26_s20 = int_to_ptr.hbm [resolvable:$true] %s25_s20 }
   0x3   :  { %19 = dma.general %s14_s14, 2048, %s16_s17, %s66_s21, %s67_s22, [#allocation4], %s68_s23, 0  }
   0x4   :  { %s27_s26 = sshll.u32 %s106_s3, 4  ;;  %s69_s0 = smov [#allocation2 + $0x1]   ;;  %s28_s26 = int_to_ptr.hbm [resolvable:$true] %s27_s26 }
   0x5   :  { %s70_s27 = smov [#allocation5]  }
   0x6   :  { %31 = dma.general %s26_s20, 6144, %s28_s26, %s69_s0, %s70_s27, [#allocation6], %s68_s23, 0  }
   0x7   :  { %62 = dma.done.wait [#allocation2], 2048 }
   0x8   :  { %63 = vsyncadd [#allocation2], 4294965248 }
   0x9   :  { %64 = dma.done.wait [#allocation2 + $0x1], 6144 }
   0xa   :  { %65 = vsyncadd [#allocation2 + $0x1], 4294961152 }
   0xb   :  { %42 = vsyncmov [#allocation2] }
   0xe   :  { %s43_s2 = vpop.sfrf %42 }
   0xf   :  { %p55_p0 = scmp.ne.s32.totalorder %s43_s2, 0 }
  0x11   :  { %47 = shalt.err (%p55_p0)  }
  0x12   :  { %49 = vsyncmov [#allocation2 + $0x1] }
  0x15   :  { %s50_s1 = vpop.sfrf %49 }
  0x16   :  { %p56_p1 = scmp.ne.s32.totalorder %s50_s1, 0 }
  0x18   :  { %54 = shalt.err (%p56_p1)  }

</bundles_post_ra>
